<compile_context>
chip_gen: v7x
topology: tpu7x:2x2x1
jax: 0.10.0
libtpu: 0.0.40
codegen_flags: <defaults>
</compile_context>

<pallas_src>
import functools

import jax
import jax.numpy as jnp
from jax.experimental import pallas as pl
from jax.experimental.pallas import tpu as pltpu


def _layernorm_kernel(x_ref, g_ref, b_ref, o_ref, *, eps, one_pass):
    # x_ref: (tile_rows, features); g_ref/b_ref: (1, features) f32 (pre-cast in
    # the wrapper; constant index_map keeps them resident across grid steps).
    x = x_ref[...].astype(jnp.float32)
    n = x.shape[-1]
    if one_pass:
        # v7x variant: one streaming pass for both reductions,
        # var = (sum(x^2) - n*mean^2) / (n - 1).
        s1 = jnp.sum(x, axis=-1, keepdims=True)
        s2 = jnp.sum(x * x, axis=-1, keepdims=True)
        mean = s1 * jnp.float32(1.0 / n)
        var = (s2 - mean * s1) * jnp.float32(1.0 / (n - 1))
        var = jnp.maximum(var, 0.0)  # guard tiny negatives from cancellation
        d = x - mean
    else:
        # torch.Tensor.std default: unbiased (divide by N-1); reference adds eps
        # to the std (NOT to the variance) — keep those semantics exactly.
        mean = jnp.mean(x, axis=-1, keepdims=True)
        d = x - mean
        var = jnp.sum(d * d, axis=-1, keepdims=True) * jnp.float32(1.0 / (n - 1))
    std = jnp.sqrt(var)
    inv = pl.reciprocal(std + jnp.float32(eps), approx=False)
    o_ref[...] = (d * inv * g_ref[...] + b_ref[...]).astype(o_ref.dtype)


def _layernorm_packed_kernel(x_ref, g_ref, b_ref, s_ref, st_ref, o_ref, *,
                             eps, features):
    # Narrow-feature path: x_ref is (tile_rows, group*features) with `group`
    # logical rows packed side-by-side along the 128-lane axis, so every load
    # and store is lane-dense.  Per-segment statistics are computed with small
    # MXU matmuls against a segment-indicator matrix:
    #   s_ref:  (group*features, group) f32, s[j, j // features] = 1
    #   st_ref: (group, group*features) f32 (its transpose, built host-side)
    # Rows are the matmul M dimension, so no cross-row mixing occurs.
    x = x_ref[...].astype(jnp.float32)
    s = s_ref[...]
    st = st_ref[...]
    n = features
    seg_sum = jnp.dot(x, s, preferred_element_type=jnp.float32)        # (T, G)
    mean_b = jnp.dot(seg_sum * jnp.float32(1.0 / n), st,
                     preferred_element_type=jnp.float32)               # (T, G*F)
    d = x - mean_b
    seg_ss = jnp.dot(d * d, s, preferred_element_type=jnp.float32)     # (T, G)
    std = jnp.sqrt(seg_ss * jnp.float32(1.0 / (n - 1)))
    inv_b = jnp.dot(pl.reciprocal(std + jnp.float32(eps), approx=False), st,
                    preferred_element_type=jnp.float32)                # (T, G*F)
    o_ref[...] = (d * inv_b * g_ref[...] + b_ref[...]).astype(o_ref.dtype)


def _chip_policy():
    """(tile_budget_bytes, vmem_limit_cap_bytes, is_v7x) for the local chip.

    128 MiB-VMEM chips (v5e/v6e): big blocks pay off (measured tiled mem-bound
    kernels go ~63% -> 85%+ of HBM roofline as blocks grow), so allow ~52 MiB
    of tile footprint and a 96 MiB scoped-VMEM limit.  64 MiB chips (v7x) or an
    unknown chip stay conservative (~22 MiB / 40 MiB).
    """
    try:
        phys = int(pltpu.get_tpu_info().vmem_capacity_bytes)
    except Exception:
        phys = None
    if phys is not None and phys >= (96 << 20):
        return 52 << 20, 96 << 20, False
    is_v7x = phys is not None  # small-VMEM chip positively detected
    return 22 << 20, 40 << 20, is_v7x


def _pick_tile_rows(rows, features, dtype, tile_budget_bytes, two_cores):
    """Row-tile size: multi-MiB blocks, bounded by the VMEM budget, aligned to
    sublane packing, and (on v7x) an even >=4 grid-step count so both
    TensorCores get a balanced, pipelined share of the parallel row grid."""
    itemsize = jnp.dtype(dtype).itemsize
    sub = {1: 32, 2: 16}.get(itemsize, 8)      # sublane packing multiple
    row_bytes = features * itemsize            # one native-dtype row of a block
    # VMEM per in-flight row: double-buffered input + output blocks (native
    # dtype) plus ~3 f32 temporaries (upcast / centered / scaled) in the body.
    vmem_per_row = features * (4 * itemsize + 12)
    cap = max(sub, tile_budget_bytes // max(vmem_per_row, 1))
    # Aim for ~8 MiB input blocks (amortizes the ~0.35 us fixed grid-step cost
    # to <5%) instead of a flat row-count cap.
    target = max(sub, (8 << 20) // max(row_bytes, 1))
    rows_up = -(-rows // sub) * sub
    tile = min(cap, target, rows_up)
    tile = max(sub, (tile // sub) * sub)

    n_units = rows_up // sub                   # sublane groups to cover
    max_units = max(1, tile // sub)
    if two_cores and n_units > 1:
        # v7x: prefer an even step count (2 TCs) and >=4 steps when the blocks
        # stay reasonably large, so neither core sits idle nor loses pipelining.
        full_block = max_units * sub * row_bytes
        for steps in (8, 6, 4, 2):
            units = -(-n_units // steps)
            if units > max_units:
                continue
            if (-(-n_units // units)) % 2 != 0:
                continue
            if units * sub * row_bytes < (512 << 10) and full_block >= (1 << 20):
                continue       # don't shrink meaningful blocks below ~512 KiB
            tile = units * sub
            break
    elif n_units >= 2 and max_units >= n_units:
        # Single-TC chips: when one block would cover everything, split in two
        # so the input/output DMA pipeline has something to overlap with.
        tile = max(sub, (-(-n_units // 2)) * sub)
    return tile


def _vmem_limit(tile_rows, features, itemsize, limit_cap):
    tile_bytes = tile_rows * features * itemsize
    f32_work = tile_rows * features * 12
    need = 4 * tile_bytes + f32_work + (4 << 20)
    return int(min(max(need, 32 << 20), limit_cap))


def layer_norm(x, gamma, beta, eps=1e-6, tile_rows=None, one_pass=None):
    """LayerNorm over the last axis, matching the PyTorch reference exactly."""
    orig_shape = x.shape
    features = orig_shape[-1]
    x2d = x.reshape(-1, features)
    rows = x2d.shape[0]
    itemsize = jnp.dtype(x.dtype).itemsize

    tile_budget, limit_cap, is_v7x = _chip_policy()
    if one_pass is None:
        # Fused sum/sumsq reduction only where it pays off (v7x: ~2.3x faster
        # HBM makes the two serialized reduction passes start to bind); v5e/v6e
        # keep the simpler, slightly more accurate two-pass math.
        one_pass = is_v7x

    gamma_f32 = gamma.astype(jnp.float32).reshape(-1)
    beta_f32 = beta.astype(jnp.float32).reshape(-1)

    if features < 128 and 128 % features == 0 and features >= 2:
        # ---- lane-packed narrow-feature path (lane-dense loads/stores) ----
        group = 128 // features
        packed_f = group * features                     # == 128
        rows_p = -(-rows // group) * group
        if rows_p != rows:
            x2d = jnp.pad(x2d, ((0, rows_p - rows), (0, 0)))
        prows = rows_p // group
        xp = x2d.reshape(prows, packed_f)
        if tile_rows is None:
            tile_rows = _pick_tile_rows(prows, packed_f, x.dtype,
                                        tile_budget, is_v7x)
        gp = jnp.tile(gamma_f32, group).reshape(1, packed_f)
        bp = jnp.tile(beta_f32, group).reshape(1, packed_f)
        seg = jnp.arange(packed_f, dtype=jnp.int32) // features
        s_mat = (seg[:, None] == jnp.arange(group, dtype=jnp.int32)[None, :]
                 ).astype(jnp.float32)                  # (packed_f, group)
        st_mat = jnp.transpose(s_mat)                   # (group, packed_f)

        out = pl.pallas_call(
            functools.partial(_layernorm_packed_kernel, eps=eps,
                              features=features),
            out_shape=jax.ShapeDtypeStruct((prows, packed_f), x.dtype),
            grid_spec=pltpu.PrefetchScalarGridSpec(
                num_scalar_prefetch=0,
                grid=(pl.cdiv(prows, tile_rows),),
                in_specs=[
                    pl.BlockSpec((tile_rows, packed_f), lambda i: (i, 0)),
                    pl.BlockSpec((1, packed_f), lambda i: (0, 0)),
                    pl.BlockSpec((1, packed_f), lambda i: (0, 0)),
                    pl.BlockSpec((packed_f, group), lambda i: (0, 0)),
                    pl.BlockSpec((group, packed_f), lambda i: (0, 0)),
                ],
                out_specs=pl.BlockSpec((tile_rows, packed_f), lambda i: (i, 0)),
            ),
            compiler_params=pltpu.CompilerParams(
                dimension_semantics=("parallel",),
                vmem_limit_bytes=_vmem_limit(tile_rows, packed_f, itemsize,
                                             limit_cap),
            ),
        )(xp, gp, bp, s_mat, st_mat)
        out = out.reshape(rows_p, features)[:rows]
        return out.reshape(orig_shape)

    # ---- standard wide-feature path ----
    # TODO(synk): feature dims that are neither >=128 nor a divisor of 128
    # (e.g. 96, 200) still take partially lane-masked stores on the last vreg;
    # add packing/padding only if such widths appear in production.
    if tile_rows is None:
        tile_rows = _pick_tile_rows(rows, features, x.dtype, tile_budget, is_v7x)

    g2d = gamma_f32.reshape(1, features)
    b2d = beta_f32.reshape(1, features)

    out = pl.pallas_call(
        functools.partial(_layernorm_kernel, eps=eps, one_pass=bool(one_pass)),
        out_shape=jax.ShapeDtypeStruct((rows, features), x.dtype),
        grid_spec=pltpu.PrefetchScalarGridSpec(
            num_scalar_prefetch=0,
            grid=(pl.cdiv(rows, tile_rows),),
            in_specs=[
                pl.BlockSpec((tile_rows, features), lambda i: (i, 0)),
                pl.BlockSpec((1, features), lambda i: (0, 0)),
                pl.BlockSpec((1, features), lambda i: (0, 0)),
            ],
            out_specs=pl.BlockSpec((tile_rows, features), lambda i: (i, 0)),
        ),
        compiler_params=pltpu.CompilerParams(
            dimension_semantics=("parallel",),
            vmem_limit_bytes=_vmem_limit(tile_rows, features, itemsize,
                                         limit_cap),
        ),
    )(x2d, g2d, b2d)
    return out.reshape(orig_shape)


def _reference(x, gamma, beta, eps):
    # Same math as the PyTorch module (unbiased std, eps added to std).
    n = x.shape[-1]
    mean = jnp.mean(x, axis=-1, keepdims=True)
    d = x - mean
    std = jnp.sqrt(jnp.sum(d * d, axis=-1, keepdims=True) / (n - 1))
    return gamma * d / (std + eps) + beta


if __name__ == "__main__":
    key = jax.random.PRNGKey(0)
    eps = 1e-6

    # Shapes implied by the module: (batch, seq, features), narrow hidden dim.
    batch, seq, features = 2, 8, 32
    k1, k2 = jax.random.split(key)
    x = jax.random.normal(k1, (batch, seq, features), dtype=jnp.float32)
    gamma = jnp.ones((features,), dtype=jnp.float32)   # nn.Parameter(torch.ones)
    beta = jnp.zeros((features,), dtype=jnp.float32)   # nn.Parameter(torch.zeros)

    y = jax.block_until_ready(layer_norm(x, gamma, beta, eps=eps))
    y_ref = _reference(x, gamma, beta, eps)
    assert jnp.allclose(y, y_ref, atol=1e-5, rtol=1e-5), "packed path mismatch"

    # Also exercise the wide (lane-dense) path and BOTH reduction variants so the
    # v7x one-pass math is validated regardless of which chip runs this script.
    features_w = 128
    xw = jax.random.normal(k2, (batch, seq, features_w), dtype=jnp.float32)
    gw = jnp.ones((features_w,), dtype=jnp.float32)
    bw = jnp.zeros((features_w,), dtype=jnp.float32)
    yw_ref = _reference(xw, gw, bw, eps)
    for op in (False, True):
        yw = jax.block_until_ready(layer_norm(xw, gw, bw, eps=eps, one_pass=op))
        assert jnp.allclose(yw, yw_ref, atol=1e-5, rtol=1e-5), (
            f"wide path mismatch (one_pass={op})")

    print("KERNEL_OK")
</pallas_src>

<mosaic_0001>
module attributes {stable_mosaic.version = 11 : i64} {
  func.func @_layernorm_packed_kernel(%arg0: i32, %arg1: memref<8x128xf32, #tpu.memory_space<vmem>>, %arg2: memref<1x128xf32, #tpu.memory_space<vmem>>, %arg3: memref<1x128xf32, #tpu.memory_space<vmem>>, %arg4: memref<128x4xf32, #tpu.memory_space<vmem>>, %arg5: memref<4x128xf32, #tpu.memory_space<vmem>>, %arg6: memref<8x128xf32, #tpu.memory_space<vmem>>) attributes {dimension_semantics = [#tpu.dimension_semantics<parallel>], iteration_bounds = array<i64: 1>, scalar_prefetch = 0 : i64, scratch_operands = 0 : i64, tpu.core_type = #tpu.core_type<tc>, window_params = [{transform_indices = @transform_0, window_bounds = array<i64: 8, 128>}, {pipeline_mode = #tpu.pipeline_mode<synchronous>, transform_indices = @transform_1, window_bounds = array<i64: 1, 128>}, {pipeline_mode = #tpu.pipeline_mode<synchronous>, transform_indices = @transform_2, window_bounds = array<i64: 1, 128>}, {pipeline_mode = #tpu.pipeline_mode<synchronous>, transform_indices = @transform_3, window_bounds = array<i64: 128, 4>}, {pipeline_mode = #tpu.pipeline_mode<synchronous>, transform_indices = @transform_4, window_bounds = array<i64: 4, 128>}, {transform_indices = @transform_5, window_bounds = array<i64: 8, 128>}]} {
    %c0 = arith.constant 0 : index
    %c0_0 = arith.constant 0 : index
    %0 = vector.load %arg1[%c0, %c0_0] : memref<8x128xf32, #tpu.memory_space<vmem>>, vector<8x128xf32>
    %c0_1 = arith.constant 0 : index
    %c0_2 = arith.constant 0 : index
    %1 = vector.load %arg4[%c0_1, %c0_2] : memref<128x4xf32, #tpu.memory_space<vmem>>, vector<128x4xf32>
    %c0_3 = arith.constant 0 : index
    %c0_4 = arith.constant 0 : index
    %2 = vector.load %arg5[%c0_3, %c0_4] : memref<4x128xf32, #tpu.memory_space<vmem>>, vector<4x128xf32>
    %cst = arith.constant dense<0.000000e+00> : vector<8x4xf32>
    %3 = tpu.matmul %0, %1, %cst {dimension_numbers = #tpu.dot_dimension_numbers<[1], [0], [0], [1], [0, 0, 1, 1], [], []>} : vector<8x128xf32>, vector<128x4xf32>, vector<8x4xf32> -> vector<8x4xf32>
    %cst_5 = arith.constant 3.125000e-02 : f32
    %4 = vector.broadcast %cst_5 : f32 to vector<8x4xf32>
    %5 = arith.mulf %3, %4 : vector<8x4xf32>
    %cst_6 = arith.constant dense<0.000000e+00> : vector<8x128xf32>
    %6 = tpu.matmul %5, %2, %cst_6 {dimension_numbers = #tpu.dot_dimension_numbers<[1], [0], [0], [1], [0, 0, 1, 1], [], []>} : vector<8x4xf32>, vector<4x128xf32>, vector<8x128xf32> -> vector<8x128xf32>
    %7 = arith.subf %0, %6 : vector<8x128xf32>
    %8 = arith.mulf %7, %7 : vector<8x128xf32>
    %cst_7 = arith.constant dense<0.000000e+00> : vector<8x4xf32>
    %9 = tpu.matmul %8, %1, %cst_7 {dimension_numbers = #tpu.dot_dimension_numbers<[1], [0], [0], [1], [0, 0, 1, 1], [], []>} : vector<8x128xf32>, vector<128x4xf32>, vector<8x4xf32> -> vector<8x4xf32>
    %cst_8 = arith.constant 0.0322580636 : f32
    %10 = vector.broadcast %cst_8 : f32 to vector<8x4xf32>
    %11 = arith.mulf %9, %10 : vector<8x4xf32>
    %12 = math.sqrt %11 : vector<8x4xf32>
    %cst_9 = arith.constant 9.99999997E-7 : f32
    %13 = vector.broadcast %cst_9 : f32 to vector<8x4xf32>
    %14 = arith.addf %12, %13 : vector<8x4xf32>
    %15 = tpu.reciprocal %14 : vector<8x4xf32> -> vector<8x4xf32>
    %cst_10 = arith.constant dense<0.000000e+00> : vector<8x128xf32>
    %16 = tpu.matmul %15, %2, %cst_10 {dimension_numbers = #tpu.dot_dimension_numbers<[1], [0], [0], [1], [0, 0, 1, 1], [], []>} : vector<8x4xf32>, vector<4x128xf32>, vector<8x128xf32> -> vector<8x128xf32>
    %17 = arith.mulf %7, %16 : vector<8x128xf32>
    %c0_11 = arith.constant 0 : index
    %c0_12 = arith.constant 0 : index
    %18 = vector.load %arg2[%c0_11, %c0_12] : memref<1x128xf32, #tpu.memory_space<vmem>>, vector<1x128xf32>
    %19 = vector.broadcast %18 : vector<1x128xf32> to vector<8x128xf32>
    %20 = arith.mulf %17, %19 : vector<8x128xf32>
    %c0_13 = arith.constant 0 : index
    %c0_14 = arith.constant 0 : index
    %21 = vector.load %arg3[%c0_13, %c0_14] : memref<1x128xf32, #tpu.memory_space<vmem>>, vector<1x128xf32>
    %22 = vector.broadcast %21 : vector<1x128xf32> to vector<8x128xf32>
    %23 = arith.addf %20, %22 : vector<8x128xf32>
    %c0_15 = arith.constant 0 : index
    %c0_16 = arith.constant 0 : index
    %24 = vector.load %arg6[%c0_15, %c0_16] : memref<8x128xf32, #tpu.memory_space<vmem>>, vector<8x128xf32>
    tpu.vector_store %arg6[%c0_15, %c0_16], %23 {strides = array<i32>} : memref<8x128xf32, #tpu.memory_space<vmem>>, vector<8x128xf32>,
    return
  }
  func.func @transform_0(%arg0: i32) -> (i32, i32) {
    %c0_i32 = arith.constant 0 : i32
    %c0_i32_0 = arith.constant 0 : i32
    return %arg0, %c0_i32 : i32, i32
  }
  func.func @transform_1(%arg0: i32) -> (i32, i32) {
    %c0_i32 = arith.constant 0 : i32
    %c0_i32_0 = arith.constant 0 : i32
    %c0_i32_1 = arith.constant 0 : i32
    return %c0_i32, %c0_i32_0 : i32, i32
  }
  func.func @transform_2(%arg0: i32) -> (i32, i32) {
    %c0_i32 = arith.constant 0 : i32
    %c0_i32_0 = arith.constant 0 : i32
    %c0_i32_1 = arith.constant 0 : i32
    return %c0_i32, %c0_i32_0 : i32, i32
  }
  func.func @transform_3(%arg0: i32) -> (i32, i32) {
    %c0_i32 = arith.constant 0 : i32
    %c0_i32_0 = arith.constant 0 : i32
    %c0_i32_1 = arith.constant 0 : i32
    return %c0_i32, %c0_i32_0 : i32, i32
  }
  func.func @transform_4(%arg0: i32) -> (i32, i32) {
    %c0_i32 = arith.constant 0 : i32
    %c0_i32_0 = arith.constant 0 : i32
    %c0_i32_1 = arith.constant 0 : i32
    return %c0_i32, %c0_i32_0 : i32, i32
  }
  func.func @transform_5(%arg0: i32) -> (i32, i32) {
    %c0_i32 = arith.constant 0 : i32
    %c0_i32_0 = arith.constant 0 : i32
    return %arg0, %c0_i32 : i32, i32
  }
}

</mosaic_0001>

<bundles_post_ra>
// kernel: tpu_custom_call.1
= control target key start
LH: loop header
LB: loop body
LE: loop exit
PB: predicated region body
PF: predicated region fallthrough
CT: control target
= control target key end

     0   :  { %10 = vsyncpa [#allocation3], 0  ;;  %v583_v2 = vmov 0.0|0.0   ;;  %vm584_vm0 = vmmov 0   ;;  %v585_v6 = vmov 0.0   ;;  %vm114_vm1 = vcmask 1043456   ;;  %s713_s0 = inlined_call_operand.vmem [shape: f32[4,128], index: 0, kind: input, shape index: {}]   ;;  %s714_s1 = inlined_call_operand.vmem [shape: f32[1,128], index: 1, kind: input, shape index: {}]   ;;  %s715_s2 = inlined_call_operand.vmem [shape: f32[1,128], index: 2, kind: input, shape index: {}]   ;;  %s716_s3 = inlined_call_operand.vmem [shape: f32[128,4], index: 3, kind: input, shape index: {}]   ;;  %s717_s4 = inlined_call_operand.vmem [shape: f32[4,128], index: 4, kind: input, shape index: {}]   ;;  %s718_s5 = inlined_call_operand.hbm [shape: f32[4,128], index: 5, kind: output, shape index: {}]  }
   0x1   :  { %v22_v0 = vld [vmem:[%s716_s3] sm:$0xff]  ;;  %v23_v1 = vld [vmem:[%s716_s3 + $0x8] sm:$0xff]  ;;  %501 = vmatprep.subr.bf16.mxu0 %v583_v2  ;;  %v24_v4 = vld [vmem:[%s716_s3 + $0x10] sm:$0xff]  ;;  %453 = vmatprep.mubr.msk.f32.mxu0 %vm584_vm0, %v585_v6  ;;  %vm110_vm2 = vcmask 31744  }
   0x2   :  { %v502_v3 = vpack.c.bf16 %v23_v1, %v22_v0  ;;  %v25_v5 = vld [vmem:[%s716_s3 + $0x18] sm:$0xff]  ;;  %456 = vmatprep.subr.mxu1 %v585_v6  ;;  %458 = vmatprep.mubr.msk.f32.mxu1 %vm584_vm0, %v585_v6  ;;  %v26_v8 = vld [vmem:[%s716_s3 + $0x20] sm:$0xff]  ;;  %v27_v9 = vld [vmem:[%s716_s3 + $0x28] sm:$0xff] }
   0x3   :  { %v505_v7 = vpack.c.bf16 %v25_v5, %v24_v4  ;;  %v508_v10 = vpack.c.bf16 %v27_v9, %v26_v8  ;;  %v28_v11 = vld [vmem:[%s716_s3 + $0x30] sm:$0xff]  ;;  %v29_v12 = vld [vmem:[%s716_s3 + $0x38] sm:$0xff]  ;;  %v30_v14 = vld [vmem:[%s716_s3 + $0x40] sm:$0xff] }
   0x4   :  { %503 = vmatpush3.bf16.msra.mxu0 %v502_v3  ;;  %v511_v13 = vpack.c.bf16 %v29_v12, %v28_v11  ;;  %v31_v15 = vld [vmem:[%s716_s3 + $0x48] sm:$0xff]  ;;  %v32_v17 = vld [vmem:[%s716_s3 + $0x50] sm:$0xff]  ;;  %v33_v18 = vld [vmem:[%s716_s3 + $0x58] sm:$0xff] }
   0x5   :  { %504 = vmatprep.subr.bf16.mxu0 %v583_v2  ;;  %v514_v16 = vpack.c.bf16 %v31_v15, %v30_v14  ;;  %v517_v19 = vpack.c.bf16 %v33_v18, %v32_v17  ;;  %v34_v20 = vld [vmem:[%s716_s3 + $0x60] sm:$0xff]  ;;  %v35_v21 = vld [vmem:[%s716_s3 + $0x68] sm:$0xff]  ;;  %v36_v23 = vld [vmem:[%s716_s3 + $0x70] sm:$0xff] }
   0x6   :  { %v520_v22 = vpack.c.bf16 %v35_v21, %v34_v20  ;;  %v37_v24 = vld [vmem:[%s716_s3 + $0x78] sm:$0xff]  ;;  %v21_v26 = vld [vmem:[%s713_s0] sm:$0xff] }
   0x7   :  { %v523_v25 = vpack.c.bf16 %v37_v24, %v36_v23  ;;  %v38_v27 = vld [vmem:[%s717_s4] sm:$0xf] }
   0x8   :  { %506 = vmatpush3.bf16.msra.mxu0 %v505_v7  ;;  %457 = vmatpush3.msk.msra.mxu1 %vm114_vm1, %v38_v27  ;;  %v381_v46 = vld [vmem:[%s714_s1] ss:$0 sm:$0xff] }
   0x9   :  { %507 = vmatprep.subr.bf16.mxu0 %v583_v2  ;;  %525 = vmatprep.subr.bf16.mxu1 %v583_v2  ;;  %v382_v49 = vld [vmem:[%s715_s2] ss:$0 sm:$0xff] }
   0xc   :  { %509 = vmatpush3.bf16.msra.mxu0 %v508_v10 }
   0xd   :  { %510 = vmatprep.subr.bf16.mxu0 %v583_v2 }
  0x10   :  { %512 = vmatpush3.bf16.msra.mxu0 %v511_v13 }
  0x11   :  { %513 = vmatprep.subr.bf16.mxu0 %v583_v2 }
  0x14   :  { %515 = vmatpush3.bf16.msra.mxu0 %v514_v16 }
  0x15   :  { %516 = vmatprep.subr.bf16.mxu0 %v583_v2 }
  0x18   :  { %518 = vmatpush3.bf16.msra.mxu0 %v517_v19 }
  0x19   :  { %519 = vmatprep.subr.bf16.mxu0 %v583_v2 }
  0x1c   :  { %521 = vmatpush3.bf16.msra.mxu0 %v520_v22 }
  0x1d   :  { %522 = vmatprep.subr.bf16.mxu0 %v583_v2 }
  0x20   :  { %524 = vmatpush3.bf16.msra.mxu0 %v523_v25 }
  0x21   :  { %496 = vmatprep.subr.mxu0 %v585_v6 }
  0x23   :  { %454 = vmatmul.mubr.f32.vlgmr.msra.gmra.mrb[0].mxu0 %v21_v26 }
  0x24   :  { %498 = vmatprep.mubr.msk.f32.mxu0 %vm584_vm0, %v585_v6  ;;  %497 = vmatpush3.msk.msra.mxu0 %vm114_vm1, %v38_v27 }
  0xf6   :  { %v105_v28 = vpop.f32.mrb[0].mxu0 }
  0xf7   :  { %v109_v29 = vmul.f32 0.03125, %v105_v28  ;;  %v455_v30 = vpop.f32.mrb[1].mxu0 }
  0xf9   :  { %459 = vmatmul.mubr.msk.f32.vlgmr.msra.gmra.mrb[0].mxu1 %vm110_vm2, %v109_v29 }
  0xfa   :  { %527 = vmatpush3.bf16.msra.mxu1 %v502_v3  ;;  %493 = vmatprep.mubr.msk.f32.mxu1 %vm584_vm0, %v585_v6 }
  0xfb   :  { %528 = vmatprep.subr.bf16.mxu1 %v583_v2 }
  0xfe   :  { %530 = vmatpush3.bf16.msra.mxu1 %v505_v7 }
  0xff   :  { %531 = vmatprep.subr.bf16.mxu1 %v583_v2 }
 0x102   :  { %533 = vmatpush3.bf16.msra.mxu1 %v508_v10 }
 0x103   :  { %534 = vmatprep.subr.bf16.mxu1 %v583_v2 }
 0x106   :  { %536 = vmatpush3.bf16.msra.mxu1 %v511_v13 }
 0x107   :  { %537 = vmatprep.subr.bf16.mxu1 %v583_v2 }
 0x10a   :  { %539 = vmatpush3.bf16.msra.mxu1 %v514_v16 }
 0x10b   :  { %540 = vmatprep.subr.bf16.mxu1 %v583_v2 }
 0x10e   :  { %542 = vmatpush3.bf16.msra.mxu1 %v517_v19 }
 0x10f   :  { %543 = vmatprep.subr.bf16.mxu1 %v583_v2 }
 0x112   :  { %545 = vmatpush3.bf16.msra.mxu1 %v520_v22 }
 0x113   :  { %546 = vmatprep.subr.bf16.mxu1 %v583_v2 }
 0x116   :  { %548 = vmatpush3.bf16.msra.mxu1 %v523_v25 }
 0x1cc   :  { %v184_v31 = vpop.f32.mrb[0].mxu1 }
 0x1cd   :  { %v188_v32 = vsub.f32 %v21_v26, %v184_v31  ;;  %v460_v33 = vpop.f32.mrb[1].mxu1 }
 0x1cf   :  { %v189_v34 = vmul.f32 %v188_v32, %v188_v32 }
 0x1d1   :  { %494 = vmatmul.mubr.f32.vlgmr.msra.gmra.mrb[2].mxu1 %v189_v34 }
 0x2a4   :  { %v256_v35 = vpop.f32.mrb[2].mxu1 }
 0x2a5   :  { %v260_v36 = vmul.f32 0.032258064, %v256_v35  ;;  %v495_v37 = vpop.f32.mrb[3].mxu1 }
 0x2a7   :  { %555 = vrsqrt.f32 %v260_v36  ;;  %vm263_vm3 = vcmp.eq.f32.partialorder %v260_v36, inf  ;;  %v266_v40 = vand.u32 2147483648, %v260_v36  ;;  %vm265_vm4 = vcmp.eq.f32.partialorder %v260_v36, 0.0 }
 0x2b1   :  { %v556_v38 = vpop.eup %555 }
 0x2b2   :  { %v262_v39 = vmul.f32 %v556_v38, %v260_v36 }
 0x2b4   :  { %v264_v41 = vsel %vm263_vm3, %v260_v36, %v262_v39 }
 0x2b5   :  { %v267_v42 = vsel %vm265_vm4, %v266_v40, %v264_v41 }
 0x2b6   :  { %v268_v43 = vadd.f32 1e-06, %v267_v42 }
 0x2b8   :  { %557 = vrcp.f32 %v268_v43 }
 0x2c2   :  { %v558_v44 = vpop.eup %557 }
 0x2c3   :  { %499 = vmatmul.mubr.msk.f32.vlgmr.msra.gmra.mrb[2].mxu0 %vm110_vm2, %v558_v44 }
 0x396   :  { %v339_v45 = vpop.f32.mrb[2].mxu0 }
 0x397   :  { %v343_v47 = vmul.f32 %v339_v45, %v188_v32  ;;  %v500_v48 = vpop.f32.mrb[3].mxu0 }
 0x399   :  { %v351_v50 = vmul.f32 %v381_v46, %v343_v47 }
 0x39b   :  { %v359_v51 = vadd.f32 %v382_v49, %v351_v50 }
 0x39d   :  { %360 = vst [vmem:[#allocation2] sm:$0xff] %v359_v51 }
 0x39e   :  { %365 = vsyncadd [#allocation3], 64  ;;  %s586_s30 = smov [#allocation2]  }
 0x39f   :  { %s366_s6 = sshll.u32 %s586_s30, 4  ;;  %s367_s6 = int_to_ptr.vmem [resolvable:$true] %s366_s6 }
 0x3a0   :  { %s559_s7 = scalar_lea.vmem %s367_s6, 64  ;;  %s563_s8 = scalar_lea.vmem %s367_s6, 128 }
 0x3a1   :  { %p560_p0 = scmp.ne.s32.totalorder %s367_s6, %s559_s7  ;;  %p564_p1 = scmp.lt.s32.totalorder %s367_s6, %s367_s6 }
 0x3a2   :  { %p565_p2 = scmp.lt.s32.totalorder %s563_s8, %s559_s7 }
 0x3a4   :  { %p566_p3 = por %p565_p2, %p564_p1 }
 0x3a6   :  { %p567_p4 = pnand %p566_p3, %p560_p0 }
 0x3a8   :  { %570 = shalt.err (!%p567_p4)
}
 0x3a9   :  { %s571_s10 = scalar_lea.hbm %s718_s5, 64 }
 0x3aa   :  { %p572_p5 = scmp.ne.s32.totalorder %s718_s5, %s571_s10  ;;  %p575_p6 = scmp.lt.u32.totalorder %s571_s10, %s718_s5 }
 0x3ac   :  { %p577_p7 = pnand %p575_p6, %p572_p5 }
 0x3ae   :  { %580 = shalt.err (!%p577_p7)
}
 0x3af   :  { %s587_s14 = smov 64   ;;  %s588_s15 = smov 4  }
 0x3b0   :  { %372 = dma.vmem_to_hbm [thread:$0]  %s367_s6, 64, %s718_s5, [#allocation3], %s587_s14, %s587_s14, %s588_s15  }
 0x3b1   :  { %581 = dma.done.wait [#allocation3], 128  }
 0x3b2   :  { %582 = vsyncadd [#allocation3], 4294967168 }
 0x3b3   :  { %376 = vsyncpa [#allocation3], 1 }

</bundles_post_ra>
